<compile_context>
chip_gen: v7x
topology: tpu7x:2x2x1
jax: 0.10.0
libtpu: 0.0.40
codegen_flags: <defaults>
</compile_context>

<pallas_src>
import jax
import jax.numpy as jnp
from jax.experimental import pallas as pl
from jax.experimental.pallas import tpu as pltpu


def _round_up(x, m):
    return ((x + m - 1) // m) * m


def _default_row_tile():
    # v7x has 2 TensorCores and 3.2 TB/s HBM: bigger tiles pay off and still
    # fit its 32 MiB scoped-VMEM default (~18-20 MiB double-buffered at 8192).
    try:
        kind = jax.devices()[0].device_kind.lower()
    except Exception:
        kind = ""
    return 8192 if "v7" in kind else 4096


def _probabilities_kernel(x_ref, w_ref, b_ref, logp_ref, p_ref):
    # x_ref: (tm, F), w_ref: (F, C), b_ref: (1, C)
    z = jnp.dot(x_ref[...], w_ref[...], preferred_element_type=jnp.float32)
    z = z + b_ref[...]                          # broadcast bias over rows
    m = jnp.max(z, axis=-1, keepdims=True)      # numerically-stable softmax
    zs = z - m
    e = jnp.exp(zs)
    s = jnp.sum(e, axis=-1, keepdims=True)
    logp = zs - jnp.log(s)
    logp_ref[...] = logp.astype(logp_ref.dtype)            # LogSoftmax
    p_ref[...] = (e / s).astype(p_ref.dtype)                # Softmax (exact)


def probabilities_forward(x, weight, bias, *, tm=None, out_dtype=jnp.float32):
    """x: (N, T, F) float32; weight: (C, F); bias: (C,).

    Returns (log_softmax, softmax), each of shape (N, T, C), dtype `out_dtype`.
    Mirrors nn.Linear (y = x @ W.T + b) followed by LogSoftmax/Softmax on dim=2.
    """
    N, T, F = x.shape
    C = weight.shape[0]
    M = N * T

    if tm is None:
        tm = _default_row_tile()
    # Keep tm a sublane multiple; shrink for tiny problems so we don't allocate
    # a huge mostly-dead tile. No full-tile padding: grid handles the ragged
    # tail block (OOB rows are never written back).
    tm = max(8, min(_round_up(tm, 8), _round_up(M, 8)))
    grid_m = pl.cdiv(M, tm)

    x2 = x.reshape(M, F)              # free reshape (contiguous)
    w_t = weight.T                    # (F, C) -- glue transpose outside kernel
    b2 = bias.reshape(1, C)

    out_shapes = (
        jax.ShapeDtypeStruct((M, C), out_dtype),
        jax.ShapeDtypeStruct((M, C), out_dtype),
    )

    grid_spec = pltpu.PrefetchScalarGridSpec(
        num_scalar_prefetch=0,
        grid=(grid_m,),
        in_specs=[
            pl.BlockSpec((tm, F), lambda i: (i, 0)),   # row tile of activations
            pl.BlockSpec((F, C), lambda i: (0, 0)),    # full weight, resident
            pl.BlockSpec((1, C), lambda i: (0, 0)),    # bias row
        ],
        out_specs=[
            pl.BlockSpec((tm, C), lambda i: (i, 0)),
            pl.BlockSpec((tm, C), lambda i: (i, 0)),
        ],
    )

    # Advisory: memory-bound, cheap compute (helps XLA schedule around the call).
    out_bytes = jnp.dtype(out_dtype).itemsize
    cost = pl.CostEstimate(
        flops=2 * M * F * C,
        transcendentals=M * C,
        bytes_accessed=4 * (M * F + F * C + C) + 2 * out_bytes * M * C,
    )

    logp2, p2 = pl.pallas_call(
        _probabilities_kernel,
        out_shape=out_shapes,
        grid_spec=grid_spec,
        compiler_params=pltpu.CompilerParams(
            # Row tiles are independent: lets v7x split the grid across its
            # 2 TensorCores; measured no-op (harmless) on v5e/v6e.
            dimension_semantics=("parallel",)
        ),
        cost_estimate=cost,
    )(x2, w_t, b2)

    return logp2.reshape(N, T, C), p2.reshape(N, T, C)


if __name__ == "__main__":
    # Small shapes consistent with the module: N x T x F input, C characters.
    N, T, F, C = 2, 8, 32, 29

    key = jax.random.PRNGKey(0)
    kx, kw, kb, kx2 = jax.random.split(key, 4)

    x = jax.random.normal(kx, (N, T, F), dtype=jnp.float32)

    # Deterministic nn.Linear-style init: U(-1/sqrt(F), 1/sqrt(F))
    bound = 1.0 / (F ** 0.5)
    weight = jax.random.uniform(kw, (C, F), jnp.float32, -bound, bound)
    bias = jax.random.uniform(kb, (C,), jnp.float32, -bound, bound)

    log_probs, probs = probabilities_forward(x, weight, bias)
    jax.block_until_ready((log_probs, probs))

    # Sanity check against plain-JAX reference (exact softmax path -> tight tol).
    z_ref = x @ weight.T + bias
    lp_ref = jax.nn.log_softmax(z_ref, axis=2)
    p_ref = jax.nn.softmax(z_ref, axis=2)
    assert jnp.allclose(log_probs, lp_ref, atol=1e-5)
    assert jnp.allclose(probs, p_ref, atol=1e-5)
    # Internal consistency: probs == exp(log_probs), rows sum to 1.
    assert jnp.allclose(probs, jnp.exp(log_probs), atol=1e-6)
    assert jnp.allclose(jnp.sum(probs, axis=-1), 1.0, atol=1e-5)

    # Exercise the multi-tile + ragged-tail path (M=150, tm=64 -> 3 blocks,
    # last block has 22 valid rows and is masked on writeback).
    x_b = jax.random.normal(kx2, (3, 50, F), dtype=jnp.float32)
    lp_b, p_b = probabilities_forward(x_b, weight, bias, tm=64)
    jax.block_until_ready((lp_b, p_b))
    zb_ref = x_b @ weight.T + bias
    assert jnp.allclose(lp_b, jax.nn.log_softmax(zb_ref, axis=2), atol=1e-5)
    assert jnp.allclose(p_b, jax.nn.softmax(zb_ref, axis=2), atol=1e-5)

    print("KERNEL_OK")
</pallas_src>

<mosaic_0001>
module attributes {stable_mosaic.version = 11 : i64} {
  func.func @_probabilities_kernel(%arg0: i32, %arg1: memref<16x32xf32, #tpu.memory_space<vmem>>, %arg2: memref<32x29xf32, #tpu.memory_space<vmem>>, %arg3: memref<1x29xf32, #tpu.memory_space<vmem>>, %arg4: memref<16x29xf32, #tpu.memory_space<vmem>>, %arg5: memref<16x29xf32, #tpu.memory_space<vmem>>) attributes {dimension_semantics = [#tpu.dimension_semantics<parallel>], iteration_bounds = array<i64: 1>, scalar_prefetch = 0 : i64, scratch_operands = 0 : i64, tpu.core_type = #tpu.core_type<tc>, window_params = [{transform_indices = @transform_0, window_bounds = array<i64: 16, 32>}, {pipeline_mode = #tpu.pipeline_mode<synchronous>, transform_indices = @transform_1, window_bounds = array<i64: 32, 29>}, {pipeline_mode = #tpu.pipeline_mode<synchronous>, transform_indices = @transform_2, window_bounds = array<i64: 1, 29>}, {transform_indices = @transform_3, window_bounds = array<i64: 16, 29>}, {transform_indices = @transform_4, window_bounds = array<i64: 16, 29>}]} {
    %c0 = arith.constant 0 : index
    %c0_0 = arith.constant 0 : index
    %0 = vector.load %arg1[%c0, %c0_0] : memref<16x32xf32, #tpu.memory_space<vmem>>, vector<16x32xf32>
    %c0_1 = arith.constant 0 : index
    %c0_2 = arith.constant 0 : index
    %1 = vector.load %arg2[%c0_1, %c0_2] : memref<32x29xf32, #tpu.memory_space<vmem>>, vector<32x29xf32>
    %cst = arith.constant dense<0.000000e+00> : vector<16x29xf32>
    %2 = tpu.matmul %0, %1, %cst {dimension_numbers = #tpu.dot_dimension_numbers<[1], [0], [0], [1], [0, 0, 1, 1], [], []>} : vector<16x32xf32>, vector<32x29xf32>, vector<16x29xf32> -> vector<16x29xf32>
    %c0_3 = arith.constant 0 : index
    %c0_4 = arith.constant 0 : index
    %3 = vector.load %arg3[%c0_3, %c0_4] : memref<1x29xf32, #tpu.memory_space<vmem>>, vector<1x29xf32>
    %4 = vector.broadcast %3 : vector<1x29xf32> to vector<16x29xf32>
    %5 = arith.addf %2, %4 : vector<16x29xf32>
    %cst_5 = arith.constant dense<0xFF800000> : vector<16xf32>
    %6 = vector.multi_reduction <maximumf>, %5, %cst_5 [1] : vector<16x29xf32> to vector<16xf32>
    %7 = vector.shape_cast %6 : vector<16xf32> to vector<16x1xf32>
    %8 = vector.broadcast %7 : vector<16x1xf32> to vector<16x29xf32>
    %9 = arith.subf %5, %8 : vector<16x29xf32>
    %10 = math.exp %9 : vector<16x29xf32>
    %cst_6 = arith.constant dense<0.000000e+00> : vector<16xf32>
    %11 = vector.multi_reduction <add>, %10, %cst_6 [1] : vector<16x29xf32> to vector<16xf32>
    %12 = vector.shape_cast %11 : vector<16xf32> to vector<16x1xf32>
    %13 = math.log %12 : vector<16x1xf32>
    %14 = vector.broadcast %13 : vector<16x1xf32> to vector<16x29xf32>
    %15 = arith.subf %9, %14 : vector<16x29xf32>
    %c0_7 = arith.constant 0 : index
    %c0_8 = arith.constant 0 : index
    %16 = vector.load %arg4[%c0_7, %c0_8] : memref<16x29xf32, #tpu.memory_space<vmem>>, vector<16x29xf32>
    tpu.vector_store %arg4[%c0_7, %c0_8], %15 {strides = array<i32>} : memref<16x29xf32, #tpu.memory_space<vmem>>, vector<16x29xf32>,
    %17 = vector.broadcast %12 : vector<16x1xf32> to vector<16x29xf32>
    %18 = arith.divf %10, %17 : vector<16x29xf32>
    %c0_9 = arith.constant 0 : index
    %c0_10 = arith.constant 0 : index
    %19 = vector.load %arg5[%c0_9, %c0_10] : memref<16x29xf32, #tpu.memory_space<vmem>>, vector<16x29xf32>
    tpu.vector_store %arg5[%c0_9, %c0_10], %18 {strides = array<i32>} : memref<16x29xf32, #tpu.memory_space<vmem>>, vector<16x29xf32>,
    return
  }
  func.func @transform_0(%arg0: i32) -> (i32, i32) {
    %c0_i32 = arith.constant 0 : i32
    %c0_i32_0 = arith.constant 0 : i32
    return %arg0, %c0_i32 : i32, i32
  }
  func.func @transform_1(%arg0: i32) -> (i32, i32) {
    %c0_i32 = arith.constant 0 : i32
    %c0_i32_0 = arith.constant 0 : i32
    %c0_i32_1 = arith.constant 0 : i32
    return %c0_i32, %c0_i32_0 : i32, i32
  }
  func.func @transform_2(%arg0: i32) -> (i32, i32) {
    %c0_i32 = arith.constant 0 : i32
    %c0_i32_0 = arith.constant 0 : i32
    %c0_i32_1 = arith.constant 0 : i32
    return %c0_i32, %c0_i32_0 : i32, i32
  }
  func.func @transform_3(%arg0: i32) -> (i32, i32) {
    %c0_i32 = arith.constant 0 : i32
    %c0_i32_0 = arith.constant 0 : i32
    return %arg0, %c0_i32 : i32, i32
  }
  func.func @transform_4(%arg0: i32) -> (i32, i32) {
    %c0_i32 = arith.constant 0 : i32
    %c0_i32_0 = arith.constant 0 : i32
    return %arg0, %c0_i32 : i32, i32
  }
}

</mosaic_0001>

<bundles_post_ra>
// kernel: tpu_custom_call.1
= control target key start
LH: loop header
LB: loop body
LE: loop exit
PB: predicated region body
PF: predicated region fallthrough
CT: control target
= control target key end

     0   :  { %10 = vsyncpa [#allocation3], 0  ;;  %s459_s0 = inlined_call_operand.hbm [shape: f32[16,32], index: 0, kind: input, shape index: {}]   ;;  %s460_s1 = inlined_call_operand.hbm [shape: f32[32,29], index: 1, kind: input, shape index: {}]   ;;  %s461_s2 = inlined_call_operand.vmem [shape: f32[1,29], index: 2, kind: input, shape index: {}]   ;;  %s462_s3 = inlined_call_operand.hbm [shape: f32[16,29], index: 3, kind: output, shape index: {0}]   ;;  %s463_s4 = inlined_call_operand.hbm [shape: f32[16,29], index: 4, kind: output, shape index: {1}]  }
   0x1   :  { %11 = vsyncpa [#allocation6], 0 }
   0x2   :  { %12 = vsyncpa [#allocation4], 0 }
   0x3   :  { %13 = vsyncpa [#allocation9], 0  ;;  %s350_s15 = smov [#allocation2]   ;;  %s254_s19 = scalar_lea.hbm %s459_s0, 256 }
   0x4   :  { %s19_s16 = sshll.u32 %s350_s15, 4  ;;  %p255_p0 = scmp.ne.s32.totalorder %s459_s0, %s254_s19  ;;  %s20_s16 = int_to_ptr.vmem [resolvable:$true] %s19_s16 }
   0x5   :  { %p258_p1 = scmp.lt.u32.totalorder %s254_s19, %s459_s0 }
   0x7   :  { %p260_p2 = pnand %p258_p1, %p255_p0 }
   0x9   :  { %263 = shalt.err (!%p260_p2)
}
   0xa   :  { %s264_s24 = scalar_lea.vmem %s20_s16, 256  ;;  %p269_p4 = scmp.lt.s32.totalorder %s20_s16, %s20_s16 }
   0xb   :  { %p265_p3 = scmp.ne.s32.totalorder %s20_s16, %s264_s24  ;;  %p270_p5 = scmp.lt.s32.totalorder %s264_s24, %s264_s24 }
   0xd   :  { %p271_p6 = por %p270_p5, %p269_p4 }
   0xf   :  { %p272_p7 = pnand %p271_p6, %p265_p3 }
  0x11   :  { %275 = shalt.err (!%p272_p7)
}
  0x12   :  { %s351_s25 = smov 128   ;;  %s352_s26 = smov 8  }
  0x13   :  { %25 = dma.hbm_to_vmem [thread:$0]  %s459_s0, 256, %s20_s16, [#allocation3], %s351_s25, %s351_s25, %s352_s26  }
  0x14   :  { %s353_s29 = smov [#allocation5]   ;;  %s276_s7 = scalar_lea.hbm %s460_s1, 512 }
  0x15   :  { %s31_s30 = sshll.u32 %s353_s29, 4  ;;  %p277_p8 = scmp.ne.s32.totalorder %s460_s1, %s276_s7  ;;  %s32_s30 = int_to_ptr.vmem [resolvable:$true] %s31_s30 }
  0x16   :  { %p280_p9 = scmp.lt.u32.totalorder %s276_s7, %s460_s1 }
  0x18   :  { %p282_p10 = pnand %p280_p9, %p277_p8 }
  0x1a   :  { %285 = shalt.err (!%p282_p10)
}
  0x1b   :  { %s286_s12 = scalar_lea.vmem %s32_s30, 512  ;;  %p291_p12 = scmp.lt.s32.totalorder %s32_s30, %s32_s30 }
  0x1c   :  { %p287_p11 = scmp.ne.s32.totalorder %s32_s30, %s286_s12  ;;  %p292_p13 = scmp.lt.s32.totalorder %s286_s12, %s286_s12 }
  0x1e   :  { %p293_p0 = por %p292_p13, %p291_p12 }
  0x20   :  { %p294_p1 = pnand %p293_p0, %p287_p11 }
  0x22   :  { %297 = shalt.err (!%p294_p1)
}
  0x23   :  { %37 = dma.hbm_to_vmem [thread:$0]  %s460_s1, 512, %s32_s30, [#allocation6], %s351_s25, %s351_s25, %s352_s26  }
  0x24   :  { %342 = dma.done.wait [#allocation3], 256  }
  0x25   :  { %343 = vsyncadd [#allocation3], 4294967040 }
  0x26   :  { %344 = dma.done.wait [#allocation6], 512  }
  0x27   :  { %345 = vsyncadd [#allocation6], 4294966784  ;;  %vm59_vm0 = vcmask 261120   ;;  %v48_v0 = vld [vmem:[#allocation5] sm:$0xff]  ;;  %v49_v1 = vld [vmem:[#allocation5 + $0x8] sm:$0xff]  ;;  %vm141_vm1 = vcmask 236544  }
  0x28   :  { %v50_v2 = vld [vmem:[#allocation5 + $0x10] sm:$0xff]  ;;  %v228_v3 = vpack.c.bf16 %v49_v1, %v48_v0  ;;  %v51_v4 = vld [vmem:[#allocation5 + $0x18] sm:$0xff]  ;;  %s355_s16 = smov [#allocation7]  }
  0x29   :  { %v46_v5 = vld [vmem:[#allocation2] sm:$0xff]  ;;  %v232_v6 = vpack.c.bf16 %v51_v4, %v50_v2  ;;  %v47_v7 = vld [vmem:[#allocation2 + $0x8] sm:$0xff]  ;;  %s179_s17 = sshll.u32 %s355_s16, 4  ;;  %s420_s17 = int_to_ptr.vmem [resolvable:$true] %s179_s17 }
  0x2a   :  { %225 = vmatprep.mubr.msk.f32.mxu0 %vm59_vm0, %v46_v5  ;;  %229 = vmatprep.subr.bf16.mxu0 %v228_v3  ;;  %v208_v8 = vld [vmem:[%s461_s2] ss:$0 sm:$0xff]  ;;  %s354_s2 = smov [#allocation8]  }
  0x2b   :  { %231 = vmatpush3.bf16.msra.mxu0 %v228_v3  ;;  %s191_s15 = sshll.u32 %s354_s2, 4  ;;  %s192_s15 = int_to_ptr.vmem [resolvable:$true] %s191_s15 }
  0x2c   :  { %233 = vmatprep.subr.bf16.mxu0 %v232_v6  ;;  %s298_s18 = scalar_lea.vmem %s192_s15, 256  ;;  %p303_p3 = scmp.lt.s32.totalorder %s192_s15, %s192_s15 }
  0x2d   :  { %p299_p2 = scmp.ne.s32.totalorder %s192_s15, %s298_s18  ;;  %p304_p4 = scmp.lt.s32.totalorder %s298_s18, %s298_s18 }
  0x2f   :  { %235 = vmatpush3.bf16.msra.mxu0 %v232_v6  ;;  %p305_p5 = por %p304_p4, %p303_p3 }
  0x31   :  { %p306_p6 = pnand %p305_p5, %p299_p2 }
  0x32   :  { %226 = vmatmul.mubr.msk.f32.vlgmr.msra.gmra.mrb[0].mxu0 %vm59_vm0, %v47_v7 }
 0x105   :  { %v227_v9 = vpop.f32.mrb[0].mxu0 }
 0x106   :  { %v132_v10 = vpop.f32.mrb[1].mxu0  ;;  %v138_v12 = vadd.f32 %v227_v9, %v208_v8 }
 0x107   :  { %v133_v11 = vadd.f32 %v208_v8, %v132_v10 }
 0x108   :  { %v145_v14 = vsel %vm141_vm1, %v138_v12, -inf }
 0x109   :  { %v142_v13 = vsel %vm141_vm1, %v133_v11, -inf }
 0x10a   :  { %143 = vmax.xlane.f32.xlu0 %v142_v13 }
 0x10e   :  { %146 = vmax.xlane.f32.xlu0 %v145_v14 }
 0x197   :  { %v144_v15 = vpop.xlane.xlu0 %143 }
 0x198   :  { %v148_v16 = vsub.f32 %v133_v11, %v144_v15 }
 0x19a   :  { %v150_v17 = vmul.f32 1.442695, %v148_v16 }
 0x19b   :  { %v147_v18 = vpop.xlane.xlu0 %146 }
 0x19c   :  { %242 = vpow2.f32 %v150_v17  ;;  %v149_v19 = vsub.f32 %v138_v12, %v147_v18 }
 0x19e   :  { %v152_v20 = vmul.f32 1.442695, %v149_v19 }
 0x1a0   :  { %244 = vpow2.f32 %v152_v20 }
 0x1a6   :  { %v243_v21 = vpop.eup %242 }
 0x1a7   :  { %v154_v22 = vsel %vm141_vm1, %v243_v21, 0.0 }
 0x1a8   :  { %155 = vadd.xlane.f32.xlu1 %v154_v22 }
 0x1aa   :  { %v245_v23 = vpop.eup %244 }
 0x1ab   :  { %v157_v24 = vsel %vm141_vm1, %v245_v23, 0.0 }
 0x1ac   :  { %158 = vadd.xlane.f32.xlu1 %v157_v24 }
 0x235   :  { %v156_v25 = vpop.xlane.xlu1 %155 }
 0x236   :  { %246 = vlog2.f32 %v156_v25 }
 0x237   :  { %248 = vrcp.f32 %v156_v25 }
 0x239   :  { %v159_v26 = vpop.xlane.xlu1 %158 }
 0x23a   :  { %250 = vlog2.f32 %v159_v26 }
 0x23b   :  { %252 = vrcp.f32 %v159_v26 }
 0x240   :  { %v247_v27 = vpop.eup %246 }
 0x241   :  { %v249_v28 = vpop.eup %248  ;;  %v161_v29 = vmul.f32 0.6931472, %v247_v27 }
 0x242   :  { %v169_v30 = vmul.f32 %v249_v28, %v243_v21 }
 0x243   :  { %v164_v31 = vsub.f32 %v148_v16, %v161_v29 }
 0x244   :  { %v251_v32 = vpop.eup %250  ;;  %172 = vst.msk [vmem:[#allocation8] sm:$0xff] %vm141_vm1, %v169_v30 }
 0x245   :  { %v253_v33 = vpop.eup %252  ;;  %166 = vst.msk [vmem:[#allocation7] sm:$0xff] %vm141_vm1, %v164_v31  ;;  %v163_v34 = vmul.f32 0.6931472, %v251_v32 }
 0x246   :  { %v171_v35 = vmul.f32 %v253_v33, %v245_v23 }
 0x247   :  { %v165_v36 = vsub.f32 %v149_v19, %v163_v34 }
 0x248   :  { %173 = vst.msk [vmem:[#allocation8 + $0x8] sm:$0xff] %vm141_vm1, %v171_v35 }
 0x249   :  { %167 = vst.msk [vmem:[#allocation7 + $0x8] sm:$0xff] %vm141_vm1, %v165_v36 }
 0x24a   :  { %309 = shalt.err (!%p306_p6)
}
 0x24b   :  { %s310_s21 = scalar_lea.hbm %s463_s4, 256 }
 0x24c   :  { %p311_p7 = scmp.ne.s32.totalorder %s463_s4, %s310_s21  ;;  %p314_p8 = scmp.lt.u32.totalorder %s310_s21, %s463_s4 }
 0x24e   :  { %p316_p9 = pnand %p314_p8, %p311_p7 }
 0x250   :  { %319 = shalt.err (!%p316_p9)
}
 0x251   :  { %197 = dma.vmem_to_hbm [thread:$0]  %s192_s15, 256, %s463_s4, [#allocation9], %s351_s25, %s351_s25, %s352_s26  }
 0x252   :  { %s320_s30 = scalar_lea.vmem %s420_s17, 256  ;;  %p325_p11 = scmp.lt.s32.totalorder %s420_s17, %s420_s17 }
 0x253   :  { %p321_p10 = scmp.ne.s32.totalorder %s420_s17, %s320_s30  ;;  %p326_p12 = scmp.lt.s32.totalorder %s320_s30, %s320_s30 }
 0x255   :  { %p327_p13 = por %p326_p12, %p325_p11 }
 0x257   :  { %p328_p0 = pnand %p327_p13, %p321_p10 }
 0x259   :  { %331 = shalt.err (!%p328_p0)
}
 0x25a   :  { %s332_s7 = scalar_lea.hbm %s462_s3, 256 }
 0x25b   :  { %p333_p1 = scmp.ne.s32.totalorder %s462_s3, %s332_s7  ;;  %p336_p2 = scmp.lt.u32.totalorder %s332_s7, %s462_s3 }
 0x25d   :  { %p338_p3 = pnand %p336_p2, %p333_p1 }
 0x25f   :  { %341 = shalt.err (!%p338_p3)
}
 0x260   :  { %185 = dma.vmem_to_hbm [thread:$0]  %s420_s17, 256, %s462_s3, [#allocation4], %s351_s25, %s351_s25, %s352_s26  }
 0x261   :  { %346 = dma.done.wait [#allocation4], 256  }
 0x262   :  { %347 = vsyncadd [#allocation4], 4294967040 }
 0x263   :  { %348 = dma.done.wait [#allocation9], 256  }
 0x264   :  { %349 = vsyncadd [#allocation9], 4294967040 }
 0x265   :  { %204 = vsyncpa [#allocation3], 1 }
 0x266   :  { %205 = vsyncpa [#allocation6], 1 }
 0x267   :  { %206 = vsyncpa [#allocation4], 1 }
 0x268   :  { %207 = vsyncpa [#allocation9], 1 }

</bundles_post_ra>
